<compile_context>
chip_gen: v7x
topology: tpu7x:2x2x1
jax: 0.10.0
libtpu: 0.0.40
codegen_flags: <defaults>
</compile_context>

<pallas_src>
import functools
import numpy as np
import jax
import jax.numpy as jnp
from jax.experimental import pallas as pl
from jax.experimental.pallas import tpu as pltpu


# ----------------------- deterministic parameter setup -----------------------

def hann_periodic(n):
    # scipy.signal.get_window('hann', n, fftbins=True)
    return 0.5 - 0.5 * np.cos(2.0 * np.pi * np.arange(n) / n)


def pad_center_np(w, size):
    lpad = (size - len(w)) // 2
    return np.pad(w, (lpad, size - len(w) - lpad))


def make_stft_bases(filter_length, hop_length, win_length, window="hann"):
    scale = filter_length / hop_length
    fourier_basis = np.fft.fft(np.eye(filter_length))
    cutoff = filter_length // 2 + 1
    fourier_basis = np.vstack(
        [np.real(fourier_basis[:cutoff, :]), np.imag(fourier_basis[:cutoff, :])]
    )                                                            # (2C, F)
    forward_basis = fourier_basis.astype(np.float32)             # (2C, F)
    inverse_basis = np.linalg.pinv(scale * fourier_basis).T.astype(np.float32)
    if window is not None:
        assert filter_length >= win_length
        fft_window = pad_center_np(hann_periodic(win_length), filter_length)
        fft_window = fft_window.astype(np.float32)
        forward_basis = forward_basis * fft_window[None, :]
        inverse_basis = inverse_basis * fft_window[None, :]
    return forward_basis, inverse_basis


def window_sumsquare_np(hop_length, win_length, n_frames, n_fft):
    n = n_fft + hop_length * (n_frames - 1)
    x = np.zeros(n, dtype=np.float32)
    win_sq = pad_center_np(hann_periodic(win_length) ** 2, n_fft)
    for i in range(n_frames):
        sample = i * hop_length
        x[sample:min(n, sample + n_fft)] += win_sq[: max(0, min(n_fft, n - sample))]
    return x


# --------------------------------- kernel ------------------------------------

def stft_kernel(prows_ref, basis_ref, norm_ref,
                mag_ref, phase_ref, rec_ref,
                *, cutoff, hop, filt, n_frames, out_rows):
    R = filt // hop                                   # taps per hop (overlap factor)
    start = (filt // 2) // hop                        # filter_length//2 trim, in rows
    T = n_frames

    # Rebuild frames^T (F, T) from R shifted lane slices of the padded rows:
    #   frames^T[j*hop + s, t] = padded[(t + j)*hop + s] = prows[s, t + j]
    prows = prows_ref[...]                                            # (hop, n_rows)
    framesT = jnp.concatenate([prows[:, j:j + T] for j in range(R)], axis=0)  # (F, T)

    # One fused MXU matmul:  [Mt ; forward_basis](F+2C, F) @ frames^T(F, T).
    #   rows [0, F)        -> yf^T   (reconstruction before overlap-add)
    #   rows [F, F+C)      -> real
    #   rows [F+C, F+2C)   -> imag
    res = jnp.dot(basis_ref[...], framesT, preferred_element_type=jnp.float32)
    yfT = res[:filt, :]                                               # (F, T)
    real = res[filt:filt + cutoff, :]                                 # (C, T)
    imag = res[filt + cutoff:, :]                                     # (C, T)

    mag_ref[...] = jnp.sqrt(real * real + imag * imag)                # (C, T)
    phase_ref[...] = jnp.arctan2(imag, real)                          # (C, T)

    # Overlap-add with stride = hop, computed fully in vregs: zero-pad yf^T on
    # the lane axis by R-1 columns each side so every tap is a full-width
    # slice, sum the R taps, normalise, and issue a single store.  The
    # filter_length//2 trim is folded into the slice offsets.
    zpad = jnp.zeros((filt, R - 1), jnp.float32)                      # R >= 2 guaranteed
    yf_pad = jnp.concatenate([zpad, yfT, zpad], axis=1)               # (F, T + 2(R-1))
    rec = yf_pad[0:hop, (R - 1) + start:(R - 1) + start + out_rows]   # j = 0 tap
    for j in range(1, R):                                             # static, unrolled
        off = (R - 1) + start - j
        rec = rec + yf_pad[j * hop:(j + 1) * hop, off:off + out_rows]
    rec_ref[...] = rec * norm_ref[...]                                # (hop, out_rows)


# -------------------------------- wrapper -------------------------------------

def stft_forward_pallas(x, filter_length, hop_length, win_length, window="hann"):
    B, NS = x.shape
    F = filter_length
    hop = hop_length
    half = F // 2
    assert NS % hop == 0 and F % hop == 0 and half % hop == 0
    # TODO(synk): general hop that does not divide filter_length/2 would need a
    # different overlap-add decomposition.
    T = NS // hop + 1
    R = F // hop
    C = F // 2 + 1
    out_rows = NS // hop
    n_rows = (NS + F) // hop                    # = T + R - 1
    L = F + hop * (T - 1)                       # = NS + F

    forward_basis, inverse_basis = make_stft_bases(F, hop, win_length, window)
    # Fused inverse:  yf^T = (inverse_basis^T @ forward_basis) @ frames^T
    mt_np = (inverse_basis.astype(np.float64).T
             @ forward_basis.astype(np.float64)).astype(np.float32)    # (F, F)
    # Single stacked basis for one MXU matmul: [Mt ; forward_basis] (F + 2C, F).
    basis = jnp.asarray(np.vstack([mt_np, forward_basis]))             # (F+2C, F)

    # Reflect pad, then view the padded signal as hop-strided rows, transposed
    # so time maps to lanes.  (JAX glue; no gather, no duplicated samples.)
    padded = jnp.pad(x.astype(jnp.float32), ((0, 0), (half, half)), mode="reflect")
    prowsT = jnp.transpose(padded.reshape(B, n_rows, hop), (0, 2, 1))  # (B, hop, n_rows)

    # window_sumsquare normalisation folded with the filter_length/hop scale,
    # laid out to match the transposed reconstruction rows.
    wsum = window_sumsquare_np(hop, win_length, T, F)                  # (L,)
    tiny = np.finfo(np.float32).tiny
    norm = np.full(L, float(F) / hop, dtype=np.float32)
    nz = wsum > tiny
    norm[nz] = (float(F) / hop) / wsum[nz]
    normT = jnp.asarray(norm[half:half + NS].reshape(out_rows, hop).T)  # (hop, out_rows)

    kernel = functools.partial(stft_kernel, cutoff=C, hop=hop, filt=F,
                               n_frames=T, out_rows=out_rows)

    grid_spec = pltpu.PrefetchScalarGridSpec(
        num_scalar_prefetch=0,
        grid=(B,),
        in_specs=[
            pl.BlockSpec((None, hop, n_rows), lambda b: (b, 0, 0)),    # padded rows^T
            pl.BlockSpec((F + 2 * C, F), lambda b: (0, 0)),            # stacked basis
            pl.BlockSpec((hop, out_rows), lambda b: (0, 0)),           # normalisation rows^T
        ],
        out_specs=[
            pl.BlockSpec((None, C, T), lambda b: (b, 0, 0)),           # magnitude (C, T)
            pl.BlockSpec((None, C, T), lambda b: (b, 0, 0)),           # phase     (C, T)
            pl.BlockSpec((None, hop, out_rows), lambda b: (b, 0, 0)),  # recon rows^T
        ],
    )

    mag, phase, rec_t = pl.pallas_call(
        kernel,
        grid_spec=grid_spec,
        out_shape=(
            jax.ShapeDtypeStruct((B, C, T), jnp.float32),
            jax.ShapeDtypeStruct((B, C, T), jnp.float32),
            jax.ShapeDtypeStruct((B, hop, out_rows), jnp.float32),
        ),
        compiler_params=pltpu.CompilerParams(dimension_semantics=("parallel",)),
    )(prowsT, basis, normT)

    # (B, hop, out_rows) -> (B, out_rows, hop) -> (B, 1, num_samples)
    reconstruction = jnp.transpose(rec_t, (0, 2, 1)).reshape(B, 1, NS)
    return mag, phase, reconstruction            # mag/phase already (B, cutoff, T)


# ---------------------------- pure-JAX reference -------------------------------

def stft_forward_reference(x, filter_length, hop_length, win_length, window="hann"):
    B, NS = x.shape
    F, hop, half = filter_length, hop_length, filter_length // 2
    T = NS // hop + 1
    L = F + hop * (T - 1)
    C = F // 2 + 1
    fwd, inv = make_stft_bases(F, hop, win_length, window)
    padded = jnp.pad(x.astype(jnp.float32), ((0, 0), (half, half)), mode="reflect")
    idx = np.arange(T)[:, None] * hop + np.arange(F)[None, :]
    frames = padded[:, idx]                                            # (B, T, F)
    ft = jnp.einsum("btf,cf->bct", frames, jnp.asarray(fwd))           # (B, 2C, T)
    real, imag = ft[:, :C], ft[:, C:]
    mag = jnp.sqrt(real * real + imag * imag)
    ph = jnp.arctan2(imag, real)
    recomb = jnp.concatenate([mag * jnp.cos(ph), mag * jnp.sin(ph)], axis=1)
    yf = jnp.einsum("bct,cf->btf", recomb, jnp.asarray(inv))           # (B, T, F)
    out = jnp.zeros((B, L), jnp.float32)
    for t in range(T):
        out = out.at[:, t * hop:t * hop + F].add(yf[:, t])
    wsum = window_sumsquare_np(hop, win_length, T, F)
    tiny = np.finfo(np.float32).tiny
    norm = np.full(L, float(F) / hop, dtype=np.float32)
    nz = wsum > tiny
    norm[nz] = (float(F) / hop) / wsum[nz]
    out = out * jnp.asarray(norm)[None, :]
    return mag, ph, out[:, half:half + NS][:, None, :]


# ----------------------------------- main --------------------------------------

if __name__ == "__main__":
    filter_length, hop_length, win_length = 16, 4, 16
    B, num_samples = 2, 112

    key = jax.random.PRNGKey(0)
    x = jax.random.normal(key, (B, num_samples), dtype=jnp.float32)

    mag, phase, recon = stft_forward_pallas(x, filter_length, hop_length, win_length)
    jax.block_until_ready(recon)

    mag_r, phase_r, recon_r = stft_forward_reference(x, filter_length, hop_length, win_length)
    assert mag.shape == (B, filter_length // 2 + 1, num_samples // hop_length + 1)
    assert phase.shape == mag.shape
    assert recon.shape == (B, 1, num_samples)
    assert np.allclose(np.asarray(mag), np.asarray(mag_r), atol=5e-2, rtol=5e-2)
    assert np.allclose(np.asarray(recon), np.asarray(recon_r), atol=5e-2, rtol=5e-2)

    print("KERNEL_OK")
</pallas_src>

<mosaic_0001>
module attributes {stable_mosaic.version = 11 : i64} {
  func.func @stft_kernel(%arg0: i32, %arg1: memref<1x4x32xf32, #tpu.memory_space<vmem>>, %arg2: memref<34x16xf32, #tpu.memory_space<vmem>>, %arg3: memref<4x28xf32, #tpu.memory_space<vmem>>, %arg4: memref<1x9x29xf32, #tpu.memory_space<vmem>>, %arg5: memref<1x9x29xf32, #tpu.memory_space<vmem>>, %arg6: memref<1x4x28xf32, #tpu.memory_space<vmem>>) attributes {dimension_semantics = [#tpu.dimension_semantics<parallel>], iteration_bounds = array<i64: 2>, scalar_prefetch = 0 : i64, scratch_operands = 0 : i64, tpu.core_type = #tpu.core_type<tc>, window_params = [{transform_indices = @transform_0, window_bounds = array<i64: 1, 4, 32>}, {pipeline_mode = #tpu.pipeline_mode<synchronous>, transform_indices = @transform_1, window_bounds = array<i64: 34, 16>}, {pipeline_mode = #tpu.pipeline_mode<synchronous>, transform_indices = @transform_2, window_bounds = array<i64: 4, 28>}, {transform_indices = @transform_3, window_bounds = array<i64: 1, 9, 29>}, {transform_indices = @transform_4, window_bounds = array<i64: 1, 9, 29>}, {transform_indices = @transform_5, window_bounds = array<i64: 1, 4, 28>}]} {
    %c0 = arith.constant 0 : index
    %c0_0 = arith.constant 0 : index
    %c0_1 = arith.constant 0 : index
    %0 = vector.load %arg1[%c0, %c0_0, %c0_1] : memref<1x4x32xf32, #tpu.memory_space<vmem>>, vector<1x4x32xf32>
    %1 = vector.shape_cast %0 : vector<1x4x32xf32> to vector<4x32xf32>
    %2 = vector.extract_strided_slice %1 {offsets = [0, 0], sizes = [4, 29], strides = [1, 1]} : vector<4x32xf32> to vector<4x29xf32>
    %3 = vector.extract_strided_slice %1 {offsets = [0, 1], sizes = [4, 29], strides = [1, 1]} : vector<4x32xf32> to vector<4x29xf32>
    %4 = vector.extract_strided_slice %1 {offsets = [0, 2], sizes = [4, 29], strides = [1, 1]} : vector<4x32xf32> to vector<4x29xf32>
    %5 = vector.extract_strided_slice %1 {offsets = [0, 3], sizes = [4, 29], strides = [1, 1]} : vector<4x32xf32> to vector<4x29xf32>
    %6 = tpu.concatenate %2, %3, %4, %5 in 0 : vector<4x29xf32>, vector<4x29xf32>, vector<4x29xf32>, vector<4x29xf32> -> vector<16x29xf32>
    %c0_2 = arith.constant 0 : index
    %c0_3 = arith.constant 0 : index
    %7 = vector.load %arg2[%c0_2, %c0_3] : memref<34x16xf32, #tpu.memory_space<vmem>>, vector<34x16xf32>
    %cst = arith.constant dense<0.000000e+00> : vector<34x29xf32>
    %8 = tpu.matmul %7, %6, %cst {dimension_numbers = #tpu.dot_dimension_numbers<[1], [0], [0], [1], [0, 0, 1, 1], [], []>} : vector<34x16xf32>, vector<16x29xf32>, vector<34x29xf32> -> vector<34x29xf32>
    %9 = vector.extract_strided_slice %8 {offsets = [0, 0], sizes = [16, 29], strides = [1, 1]} : vector<34x29xf32> to vector<16x29xf32>
    %10 = vector.extract_strided_slice %8 {offsets = [16, 0], sizes = [9, 29], strides = [1, 1]} : vector<34x29xf32> to vector<9x29xf32>
    %11 = vector.extract_strided_slice %8 {offsets = [25, 0], sizes = [9, 29], strides = [1, 1]} : vector<34x29xf32> to vector<9x29xf32>
    %12 = arith.mulf %10, %10 : vector<9x29xf32>
    %13 = arith.mulf %11, %11 : vector<9x29xf32>
    %14 = arith.addf %12, %13 : vector<9x29xf32>
    %15 = math.sqrt %14 : vector<9x29xf32>
    %c0_4 = arith.constant 0 : index
    %c0_5 = arith.constant 0 : index
    %c0_6 = arith.constant 0 : index
    %16 = vector.load %arg4[%c0_4, %c0_5, %c0_6] : memref<1x9x29xf32, #tpu.memory_space<vmem>>, vector<1x9x29xf32>
    %17 = vector.shape_cast %16 : vector<1x9x29xf32> to vector<9x29xf32>
    %18 = vector.shape_cast %15 : vector<9x29xf32> to vector<1x9x29xf32>
    tpu.vector_store %arg4[%c0_4, %c0_5, %c0_6], %18 {strides = array<i32>} : memref<1x9x29xf32, #tpu.memory_space<vmem>>, vector<1x9x29xf32>,
    %19 = math.atan2 %11, %10 : vector<9x29xf32>
    %c0_7 = arith.constant 0 : index
    %c0_8 = arith.constant 0 : index
    %c0_9 = arith.constant 0 : index
    %20 = vector.load %arg5[%c0_7, %c0_8, %c0_9] : memref<1x9x29xf32, #tpu.memory_space<vmem>>, vector<1x9x29xf32>
    %21 = vector.shape_cast %20 : vector<1x9x29xf32> to vector<9x29xf32>
    %22 = vector.shape_cast %19 : vector<9x29xf32> to vector<1x9x29xf32>
    tpu.vector_store %arg5[%c0_7, %c0_8, %c0_9], %22 {strides = array<i32>} : memref<1x9x29xf32, #tpu.memory_space<vmem>>, vector<1x9x29xf32>,
    %cst_10 = arith.constant 0.000000e+00 : f32
    %23 = vector.broadcast %cst_10 : f32 to vector<16x3xf32>
    %24 = tpu.concatenate %23, %9, %23 in 1 : vector<16x3xf32>, vector<16x29xf32>, vector<16x3xf32> -> vector<16x35xf32>
    %25 = vector.extract_strided_slice %24 {offsets = [0, 5], sizes = [4, 28], strides = [1, 1]} : vector<16x35xf32> to vector<4x28xf32>
    %26 = vector.extract_strided_slice %24 {offsets = [4, 4], sizes = [4, 28], strides = [1, 1]} : vector<16x35xf32> to vector<4x28xf32>
    %27 = arith.addf %25, %26 : vector<4x28xf32>
    %28 = vector.extract_strided_slice %24 {offsets = [8, 3], sizes = [4, 28], strides = [1, 1]} : vector<16x35xf32> to vector<4x28xf32>
    %29 = arith.addf %27, %28 : vector<4x28xf32>
    %30 = vector.extract_strided_slice %24 {offsets = [12, 2], sizes = [4, 28], strides = [1, 1]} : vector<16x35xf32> to vector<4x28xf32>
    %31 = arith.addf %29, %30 : vector<4x28xf32>
    %c0_11 = arith.constant 0 : index
    %c0_12 = arith.constant 0 : index
    %32 = vector.load %arg3[%c0_11, %c0_12] : memref<4x28xf32, #tpu.memory_space<vmem>>, vector<4x28xf32>
    %33 = arith.mulf %31, %32 : vector<4x28xf32>
    %c0_13 = arith.constant 0 : index
    %c0_14 = arith.constant 0 : index
    %c0_15 = arith.constant 0 : index
    %34 = vector.load %arg6[%c0_13, %c0_14, %c0_15] : memref<1x4x28xf32, #tpu.memory_space<vmem>>, vector<1x4x28xf32>
    %35 = vector.shape_cast %34 : vector<1x4x28xf32> to vector<4x28xf32>
    %36 = vector.shape_cast %33 : vector<4x28xf32> to vector<1x4x28xf32>
    tpu.vector_store %arg6[%c0_13, %c0_14, %c0_15], %36 {strides = array<i32>} : memref<1x4x28xf32, #tpu.memory_space<vmem>>, vector<1x4x28xf32>,
    return
  }
  func.func @transform_0(%arg0: i32) -> (i32, i32, i32) {
    %c0_i32 = arith.constant 0 : i32
    %c0_i32_0 = arith.constant 0 : i32
    %c0_i32_1 = arith.constant 0 : i32
    return %arg0, %c0_i32, %c0_i32_0 : i32, i32, i32
  }
  func.func @transform_1(%arg0: i32) -> (i32, i32) {
    %c0_i32 = arith.constant 0 : i32
    %c0_i32_0 = arith.constant 0 : i32
    %c0_i32_1 = arith.constant 0 : i32
    return %c0_i32, %c0_i32_0 : i32, i32
  }
  func.func @transform_2(%arg0: i32) -> (i32, i32) {
    %c0_i32 = arith.constant 0 : i32
    %c0_i32_0 = arith.constant 0 : i32
    %c0_i32_1 = arith.constant 0 : i32
    return %c0_i32, %c0_i32_0 : i32, i32
  }
  func.func @transform_3(%arg0: i32) -> (i32, i32, i32) {
    %c0_i32 = arith.constant 0 : i32
    %c0_i32_0 = arith.constant 0 : i32
    %c0_i32_1 = arith.constant 0 : i32
    return %arg0, %c0_i32, %c0_i32_0 : i32, i32, i32
  }
  func.func @transform_4(%arg0: i32) -> (i32, i32, i32) {
    %c0_i32 = arith.constant 0 : i32
    %c0_i32_0 = arith.constant 0 : i32
    %c0_i32_1 = arith.constant 0 : i32
    return %arg0, %c0_i32, %c0_i32_0 : i32, i32, i32
  }
  func.func @transform_5(%arg0: i32) -> (i32, i32, i32) {
    %c0_i32 = arith.constant 0 : i32
    %c0_i32_0 = arith.constant 0 : i32
    %c0_i32_1 = arith.constant 0 : i32
    return %arg0, %c0_i32, %c0_i32_0 : i32, i32, i32
  }
}

</mosaic_0001>

<bundles_post_ra>
// kernel: tpu_custom_call.1
= control target key start
LH: loop header
LB: loop body
LE: loop exit
PB: predicated region body
PF: predicated region fallthrough
CT: control target
= control target key end

     0   :  { %11 = vsyncpa [#allocation3], 0  ;;  %s1173_s0 = inlined_call_operand.vmem [shape: f32[2,4,32], index: 0, kind: input, shape index: {}]   ;;  %s1174_s1 = inlined_call_operand.vmem [shape: f32[34,16], index: 1, kind: input, shape index: {}]   ;;  %s1175_s2 = inlined_call_operand.vmem [shape: f32[4,28], index: 2, kind: input, shape index: {}]   ;;  %s1176_s3 = inlined_call_operand.vmem [shape: f32[2,9,29], index: 3, kind: output, shape index: {0}]   ;;  %s1177_s4 = inlined_call_operand.vmem [shape: f32[2,9,29], index: 4, kind: output, shape index: {1}]   ;;  %s1178_s5 = inlined_call_operand.hbm [shape: f32[2,4,28], index: 5, kind: output, shape index: {2}]  }
   0x1   :  { %13 = vsyncpa [#allocation3 + $0x1], 0  ;;  %s907_s18 = smov 0   ;;  %s909_s19 = smov 0  }
   0x2   :  { %s911_s20 = smov 0   ;;  %s913_s21 = smov 0  }
   0x3 LB: > { %s928_s22 = sadd.s32 4294967295, %s862_s21   ;;  %s689_s23 = sadd.s32 4294967294, %s862_s21   ;;  %s862_s21 = sphi %s913_s21, %s1192_s21   ;;  %s858_s20 = sphi %s911_s20, %s1191_s20   ;;  %s854_s19 = sphi %s909_s19, %s1190_s19   ;;  %s850_s18 = sphi %s907_s18, %s1189_s18  }
   0x4   : > { %s932_s24 = sadd.s32 1, %s862_s21   ;;  %s146_s25 = sadd.s32 1, %s858_s20 }
   0x5   : > { %s143_s26 = ssub.s32 %s862_s21, %s932_s24  ;;  %p156_p0 = scmp.ne.s32.totalorder %s858_s20, %s854_s19 }
   0x6   : > { %p144_p1 = scmp.eq.s32.totalorder %s143_s26, 0  ;;  %p157_p2 = scmp.eq.s32.totalorder %s928_s22, 1 }
   0x7   : > { %p162_p3 = scmp.ne.s32.totalorder %s854_s19, %s850_s18  ;;  %p163_p4 = scmp.eq.s32.totalorder %s689_s23, 1 }
   0x8   : > { %s943_s27 = scalar_select %p144_p1, %s858_s20, %s146_s25  }
   0x9   : > { %p945_p5 = por %p157_p2, %p156_p0  ;;  %p949_p6 = por %p163_p4, %p162_p3 }
   0xa   : > { %p692_p7 = scmp.ge.s32.totalorder %s862_s21, 1  ;;  %p194_p8 = scmp.lt.s32.totalorder %s862_s21, 3 }
   0xc   : > { %p195_p9 = pnand %p692_p7, %p194_p8 }
   0xd   : > { %p231_p10 = scmp.lt.s32.totalorder (!%p195_p9), %s928_s22, 1  ;;  %v864_v0 = vmov (!%p195_p9), 0.0|0.0   ;;  %vm865_vm0 = vmmov (!%p195_p9), 0   ;;  %v866_v1 = vmov (!%p195_p9), 0.0   ;;  %s867_s10 = smov (!%p195_p9), 127   ;;  %vm257_vm1 = vcmask (!%p195_p9), 1043456  }
   0xe   : > { %198 = sbr.rel (%p195_p9) target bundleno = 736 (0x2e0), region = 32  ;;  %736 = vmatprep.subr.bf16.mxu0 (!%p195_p9), %v864_v0  ;;  %739 = vmatprep.subr.bf16.mxu1 (!%p195_p9), %v864_v0  ;;  %s868_s11 = smov (!%p195_p9), 125   ;;  %v260_v10 = vld [vmem:[%s1174_s1] sm:$0xff] (!%p195_p9)  ;;  %vm265_vm2 = vcmask (!%p195_p9), 130048   ;;  %v261_v11 = vld [vmem:[%s1174_s1 + $0x8] sm:$0xff] (!%p195_p9)  ;;  %v262_v12 = vld [vmem:[%s1174_s1 + $0x10] sm:$0xff] (!%p195_p9) }
   0xf   : > { %721 = vmatprep.mubr.msk.f32.mxu0 (!%p195_p9), %vm865_vm0, %v866_v1  ;;  %730 = vmatprep.mubr.msk.f32.mxu1 (!%p195_p9), %vm865_vm0, %v866_v1  ;;  %s869_s12 = smov (!%p195_p9), 126   ;;  %v263_v13 = vld [vmem:[%s1174_s1 + $0x18] sm:$0xff] (!%p195_p9)  ;;  %v264_v14 = vld [vmem:[%s1174_s1 + $0x20] sm:$0x3] (!%p195_p9)  ;;  %s870_s8 = smov (!%p195_p9), 3   ;;  %vm404_vm4 = vcmask (!%p195_p9), 1040384  }
  0x10   : > { %vm376_vm11 = vcmask (!%p195_p9), 1046528   ;;  %s871_s13 = smov (!%p195_p9), 1   ;;  %s872_s14 = smov (!%p195_p9), 2  }
  0x11   : > { %s873_s17 = smov (!%p195_p9), 5  }
  0x15   : > { %s957_s30 = scalar_select %p231_p10, %s928_s22, 1 }
  0x17   : > { %s694_s6 = sshll.u32 %s957_s30, 2 }
  0x18   : > { %s234_s9 = scalar_lea.vmem %s1173_s0, %s694_s6  ;;  %s228_s6 = sand.u32 1, %s854_s19  }
  0x19   : > { %v245_v2 = vld [vmem:[%s234_s9] sm:$0xf]  ;;  %s708_s9 = sshll.u32 %s957_s30, 4  ;;  %s875_s30 = smov 123  }
  0x1a   : > { %v247_v3 = vrot.slane %v245_v2, 4  ;;  %s244_s26 = scalar_lea.vmem %s1177_s4, %s708_s9  ;;  %s693_s7 = sshll.u32 %s228_s6, 2 }
  0x1c   : > { %248 = vrot.lane.b32.xlu0 %v247_v3, %s867_s10  ;;  %254 = vrot.lane.b32.xlu1 %v247_v3, %s868_s11 }
  0x20   : > { %251 = vrot.lane.b32.xlu0 %v245_v2, %s869_s12  ;;  %s239_s12 = scalar_lea.vmem %s1176_s3, %s708_s9  ;;  %s230_s9 = scalar_lea.vmem [#allocation2], %s693_s7 }
  0x21   : > { %s580_s10 = sshll.u32 %s230_s9, 4  ;;  %s1133_s10 = int_to_ptr.vmem [resolvable:$true] %s580_s10 }
  0x22   : > { %s800_s15 = scalar_lea.vmem %s1133_s10, 64 }
  0x23   : > { %p801_p11 = scmp.ne.s32.totalorder %s1133_s10, %s800_s15 }
  0x25   : > { %p802_p12 = pnand %p801_p11, %p945_p5 }
  0x27   : > { %p803_p13 = pneg %p802_p12 }
  0x8e   : > { %v249_v4 = vpop.permute.xlu0 %248  ;;  %v255_v5 = vpop.permute.xlu1 %254 }
  0x8f   : > { %v258_v7 = vsel %vm257_vm1, %v245_v2, %v249_v4 }
  0x92   : > { %v252_v6 = vpop.permute.xlu0 %251 }
  0x93   : > { %v259_v8 = vsel %vm257_vm1, %v252_v6, %v255_v5 }
  0x94   : > { %v737_v9 = vpack.c.bf16 %v259_v8, %v258_v7 }
  0x96   : > { %738 = vmatpush3.bf16.msra.mxu0 %v737_v9  ;;  %740 = vmatpush3.bf16.msra.mxu1 %v737_v9 }
  0x99   : > { %722 = vmatmul.mubr.msk.f32.vlgmr.msra.gmra.mrb[0].mxu0 %vm265_vm2, %v260_v10  ;;  %731 = vmatmul.mubr.msk.f32.vlgmr.msra.gmra.mrb[0].mxu1 %vm265_vm2, %v263_v13 }
  0x9a   : > { %724 = vmatprep.mubr.msk.f32.mxu0 %vm865_vm0, %v866_v1  ;;  %733 = vmatprep.mubr.msk.f32.mxu1 %vm865_vm0, %v866_v1 }
  0x9d   : > { %725 = vmatmul.mubr.msk.f32.gmra.mrb[2].mxu0 %vm265_vm2, %v261_v11  ;;  %734 = vmatmul.mubr.msk.f32.gmra.mrb[2].mxu1 %vm265_vm2, %v264_v14 }
  0x9e   : > { %727 = vmatprep.mubr.msk.f32.mxu0 %vm865_vm0, %v866_v1 }
  0xa1   : > { %728 = vmatmul.mubr.msk.f32.gmra.mrb[4].mxu0 %vm265_vm2, %v262_v12 }
 0x16c   : > { %v347_v15 = vpop.f32.mrb[0].mxu0  ;;  %v990_v20 = vpop.f32.mrb[0].mxu1 }
 0x16d   : > { %510 = vrot.lane.b32.xlu1 %v347_v15, %s870_s8  ;;  %v723_v16 = vpop.f32.mrb[1].mxu0  ;;  %v732_v22 = vpop.f32.mrb[1].mxu1  ;;  %v372_v24 = vmul.f32 %v990_v20, %v990_v20  ;;  %v406_v25 = vrot.slane %v990_v20, 7  ;;  %v998_v26 = vand.u32 2147483647, %v990_v20  ;;  %vm445_vm3 = vcmp.ne.f32.partialorder %v990_v20, %v990_v20 }
 0x16f   : > { %vm451_vm6 = vcmp.eq.s32.totalorder %v998_v26, inf  ;;  %v377_v33 = vrot.slane %v372_v24, 1 }
 0x170   : > { %v352_v17 = vpop.f32.mrb[2].mxu0  ;;  %v1008_v28 = vpop.f32.mrb[2].mxu1 }
 0x171   : > { %512 = vrot.lane.b32.xlu0 %v352_v17, %s870_s8  ;;  %v726_v18 = vpop.f32.mrb[3].mxu0  ;;  %v735_v32 = vpop.f32.mrb[3].mxu1  ;;  %v373_v35 = vmul.f32 %v1008_v28, %v1008_v28  ;;  %v1031_v37 = vand.u32 2147483647, %v1008_v28  ;;  %vm492_vm13 = vcmp.ne.f32.partialorder %v1008_v28, %v1008_v28 }
 0x173   : > { %v378_v40 = vrot.slane %v373_v35, 1  ;;  %vm498_vm1 = vcmp.eq.s32.totalorder %v1031_v37, inf }
 0x174   : > { %v357_v19 = vpop.f32.mrb[4].mxu0 }
 0x175   : > { %v992_v21 = vrot.slane %v357_v19, 7  ;;  %v729_v23 = vpop.f32.mrb[5].mxu0  ;;  %v371_v38 = vmul.f32 %v357_v19, %v357_v19  ;;  %v379_v44 = vsel %vm376_vm11, %v377_v33, %v378_v40  ;;  %v383_v45 = vadd.f32 %v378_v40, %v372_v24  ;;  %v538_v19 = vld [vmem:[%s1175_s2] sm:$0xf] }
 0x177   : > { %v1003_v27 = vand.u32 2147483647, %v992_v21  ;;  %vm444_vm5 = vcmp.ne.f32.partialorder %v992_v21, %v992_v21  ;;  %v1028_v36 = vsel %vm404_vm4, %v992_v21, %v406_v25  ;;  %v382_v46 = vadd.f32 %v379_v44, %v371_v38 }
 0x178   : > { %vm1016_vm8 = vmor %vm444_vm5, %vm445_vm3  ;;  %v1034_v39 = vand.u32 2147483647, %v1028_v36  ;;  %vm491_vm12 = vcmp.ne.f32.partialorder %v1028_v36, %v1028_v36  ;;  %vm516_vm3 = vcmask 23552   ;;  %vm400_vm4 = vcmask 229376  }
 0x179   : > { %v412_v29 = vmin.f32 %v1003_v27, %v998_v26  ;;  %v413_v30 = vmax.f32 %v1003_v27, %v998_v26  ;;  %vm434_vm7 = vcmp.gt.f32.partialorder %v998_v26, %v1003_v27  ;;  %vm450_vm9 = vcmp.eq.s32.totalorder %v1003_v27, inf  ;;  %vm1046_vm15 = vmor %vm491_vm12, %vm492_vm13 }
 0x17a   : > { %vm1021_vm10 = vmand %vm450_vm9, %vm451_vm6  ;;  %v459_v41 = vmin.f32 %v1034_v39, %v1031_v37  ;;  %v460_v42 = vmax.f32 %v1034_v39, %v1031_v37  ;;  %vm481_vm14 = vcmp.gt.f32.partialorder %v1031_v37, %v1034_v39  ;;  %vm497_vm0 = vcmp.eq.s32.totalorder %v1034_v39, inf }
 0x17b   : > { %792 = vrcp.f32 %v413_v30  ;;  %vm1052_vm2 = vmand %vm497_vm0, %vm498_vm1  ;;  %vm393_vm5 = vcmp.eq.f32.partialorder %v383_v45, inf  ;;  %v396_v54 = vand.u32 2147483648, %v383_v45  ;;  %vm386_vm6 = vcmp.eq.f32.partialorder %v382_v46, inf }
 0x17c   : > { %794 = vrcp.f32 %v460_v42  ;;  %v389_v57 = vand.u32 2147483648, %v382_v46  ;;  %vm395_vm9 = vcmp.eq.f32.partialorder %v383_v45, 0.0  ;;  %vm388_vm11 = vcmp.eq.f32.partialorder %v382_v46, 0.0 }
 0x17d   : > { %796 = vrsqrt.f32 %v383_v45  ;;  %vm519_vm12 = vcmask 261120   ;;  %vm398_vm13 = vcmask 236544   ;;  %vm440_vm0 = vcmp.lt.s32.totalorder %v992_v21, 0 }
 0x17e   : > { %798 = vrsqrt.f32 %v382_v46  ;;  %vm437_vm1 = vcmp.lt.f32.partialorder %v992_v21, 0.0  ;;  %v455_v21 = vand.u32 2147483648, %v990_v20 }
 0x185   : > { %v793_v48 = vpop.eup %792 }
 0x186   : > { %v1056_v49 = vmul.f32 %v793_v48, %v412_v29  ;;  %v795_v51 = vpop.eup %794 }
 0x187   : > { %v797_v52 = vpop.eup %796  ;;  %v1063_v55 = vmul.f32 %v795_v51, %v459_v41 }
 0x188   : > { %v1060_v50 = vmul.f32 %v1056_v49, %v1056_v49  ;;  %v799_v56 = vpop.eup %798  ;;  %v392_v58 = vmul.f32 %v797_v52, %v383_v45 }
 0x189   : > { %v385_v60 = vmul.f32 %v799_v56, %v382_v46  ;;  %v463_v61 = vmul.f32 %v1063_v55, %v1063_v55 }
 0x18a   : > { %v417_v53 = vmul.f32 0.002785687, %v1060_v50  ;;  %v394_v62 = vsel %vm393_vm5, %v383_v45, %v392_v58  ;;  %vm489_vm5 = vcmp.eq.f32.partialorder %v1008_v28, 0.0 }
 0x18b   : > { %v387_v2 = vsel %vm386_vm6, %v382_v46, %v385_v60  ;;  %v397_v3 = vsel %vm395_vm9, %v396_v54, %v394_v62  ;;  %v464_v4 = vmul.f32 0.002785687, %v463_v61  ;;  %v441_v60 = vsel %vm440_vm0, 3.1415927, %v866_v1 }
 0x18c   : > { %v418_v59 = vadd.f32 -0.015866, %v417_v53  ;;  %v390_v6 = vsel %vm388_vm11, %v389_v57, %v387_v2  ;;  %401 = vst.msk [vmem:[%s239_s12 + $0x8] sm:$0x1] %vm400_vm4, %v397_v3  ;;  %vm487_vm4 = vcmp.lt.s32.totalorder %v1028_v36, 0 }
 0x18d   : > { %399 = vst.msk [vmem:[%s239_s12] sm:$0xff] %vm398_vm13, %v390_v6  ;;  %v465_v9 = vadd.f32 -0.015866, %v464_v4  ;;  %v488_v3 = vsel %vm487_vm4, 3.1415927, %v866_v1  ;;  %v502_v1 = vand.u32 2147483648, %v1008_v28 }
 0x18e   : > { %v419_v0 = vmul.f32 %v418_v59, %v1060_v50 }
 0x18f   : > { %v466_v13 = vmul.f32 %v465_v9, %v463_v61 }
 0x190   : > { %v420_v8 = vadd.f32 0.04247222, %v419_v0 }
 0x191   : > { %v467_v17 = vadd.f32 0.04247222, %v466_v13 }
 0x192   : > { %v421_v12 = vmul.f32 %v420_v8, %v1060_v50 }
 0x193   : > { %v468_v23 = vmul.f32 %v467_v17, %v463_v61 }
 0x194   : > { %v422_v16 = vadd.f32 -0.074975304, %v421_v12 }
 0x195   : > { %v469_v25 = vadd.f32 -0.074975304, %v468_v23 }
 0x196   : > { %v423_v22 = vmul.f32 %v422_v16, %v1060_v50 }
 0x197   : > { %v470_v30 = vmul.f32 %v469_v25, %v463_v61 }
 0x198   : > { %v424_v24 = vadd.f32 0.1064488, %v423_v22 }
 0x199   : > { %v471_v33 = vadd.f32 0.1064488, %v470_v30 }
 0x19a   : > { %v425_v29 = vmul.f32 %v424_v24, %v1060_v50 }
 0x19b   : > { %v472_v38 = vmul.f32 %v471_v33, %v463_v61 }
 0x19c   : > { %v426_v32 = vadd.f32 -0.14207031, %v425_v29 }
 0x19d   : > { %v473_v41 = vadd.f32 -0.14207031, %v472_v38 }
 0x19e   : > { %v427_v35 = vmul.f32 %v426_v32, %v1060_v50 }
 0x19f   : > { %v474_v44 = vmul.f32 %v473_v41, %v463_v61 }
 0x1a0   : > { %v428_v40 = vadd.f32 0.19993454, %v427_v35 }
 0x1a1   : > { %v475_v46 = vadd.f32 0.19993454, %v474_v44 }
 0x1a2   : > { %v429_v42 = vmul.f32 %v428_v40, %v1060_v50 }
 0x1a3   : > { %v476_v51 = vmul.f32 %v475_v46, %v463_v61 }
 0x1a4   : > { %v430_v45 = vadd.f32 -0.33333147, %v429_v42 }
 0x1a5   : > { %v477_v53 = vadd.f32 -0.33333147, %v476_v51 }
 0x1a6   : > { %v431_v48 = vmul.f32 %v430_v45, %v1060_v50 }
 0x1a7   : > { %v478_v56 = vmul.f32 %v477_v53, %v463_v61  ;;  %v874_v61 = vmov 0.7853982  }
 0x1a8   : > { %v432_v52 = vmul.f32 %v431_v48, %v1056_v49 }
 0x1a9   : > { %v479_v58 = vmul.f32 %v478_v56, %v1063_v55 }
 0x1aa   : > { %v433_v54 = vadd.f32 %v432_v52, %v1056_v49 }
 0x1ab   : > { %v480_v50 = vadd.f32 %v479_v58, %v1063_v55 }
 0x1ac   : > { %v435_v57 = vsub.f32 1.5707964, %v433_v54 }
 0x1ad   : > { %v482_v49 = vsub.f32 1.5707964, %v480_v50 }
 0x1ae   : > { %v436_v59 = vsel %vm434_vm7, %v435_v57, %v433_v54  ;;  %vm484_vm7 = vcmp.lt.f32.partialorder %v1028_v36, 0.0 }
 0x1af   : > { %v438_v62 = vsub.f32 3.1415927, %v436_v59  ;;  %v483_v26 = vsel %vm481_vm14, %v482_v49, %v480_v50  ;;  %vm504_vm14 = vcmask 236545  }
 0x1b0   : > { %v485_v55 = vsub.f32 3.1415927, %v483_v26 }
 0x1b1   : > { %v439_v0 = vsel %vm437_vm1, %v438_v62, %v436_v59 }
 0x1b2   : > { %v486_v6 = vsel %vm484_vm7, %v485_v55, %v483_v26 }
 0x1b3   : > { %v490_v36 = vsel %vm489_vm5, %v488_v3, %v486_v6 }
 0x1b4   : > { %v494_v37 = vsel %vm1046_vm15, nan, %v490_v36 }
 0x1df   : > { %v511_v63 = vpop.permute.xlu1 %510 }
 0x1e0   : > { %v517_v5 = vsel %vm516_vm3, 0.0, %v511_v63  ;;  %v449_v63 = vsel %vm437_vm1, 2.3561945, %v874_v61 }
 0x1e1   : > { %v1077_v7 = vsel %vm519_vm12, %v517_v5, 0.0 }
 0x1e2   : > { %v523_v10 = vrot.slane %v1077_v7, 4 }
 0x1e3   : > { %v513_v11 = vpop.permute.xlu0 %512 }
 0x1e4   : > { %v518_v14 = vsel %vm516_vm3, 0.0, %v513_v11  ;;  %524 = vrot.lane.b32.xlu1 %v523_v10, %s871_s13  ;;  %vm442_vm3 = vcmp.eq.f32.partialorder %v990_v20, 0.0  ;;  %v496_v20 = vsel %vm484_vm7, 2.3561945, %v874_v61 }
 0x1e5   : > { %v521_v15 = vsel %vm519_vm12, %v518_v14, 0.0  ;;  %v443_v2 = vsel %vm442_vm3, %v441_v60, %v439_v0  ;;  %v500_v34 = vsel %vm1052_vm2, %v496_v20, %v494_v37 }
 0x1e6   : > { %v533_v18 = vrot.slane %v521_v15, 4  ;;  %529 = vrot.lane.b32.xlu0 %v521_v15, %s872_s14  ;;  %v447_v27 = vsel %vm1016_vm8, nan, %v443_v2  ;;  %v501_v39 = vand.u32 2147483647, %v500_v34  ;;  %vm506_vm8 = vcmask 230400   ;;  %s561_s14 = scalar_lea.sflag [#allocation3], %s228_s6 }
 0x1e7   : > { %v453_v4 = vsel %vm1021_vm10, %v449_v63, %v447_v27  ;;  %vm548_vm10 = vcmask 224256  }
 0x1e8   : > { %534 = vrot.lane.b32.xlu1 %v533_v18, %s870_s8  ;;  %v454_v5 = vand.u32 2147483647, %v453_v4  ;;  %v503_v8 = vor.u32 %v502_v1, %v501_v39  ;;  %s705_s8 = sshll.u32 %s928_s22, 6  ;;  %s876_s22 = smov [#allocation2]  }
 0x1e9   : > { %s1131_s13 = scalar_lea.hbm %s1178_s5, %s705_s8  ;;  %s804_s16 = sshll.u32 %s876_s22, 4  ;;  %s805_s16 = int_to_ptr.vmem [resolvable:$false] %s804_s16 }
 0x1ea   : > { %540 = vrot.lane.b32.xlu0 %v538_v19, %s873_s17  ;;  %v456_v31 = vor.u32 %v455_v21, %v454_v5  ;;  %507 = vst.msk [vmem:[%s244_s26 + $0x7] sm:$0x3] %vm506_vm8, %v503_v8  ;;  %s806_s17 = scalar_lea.vmem %s805_s16, 128  ;;  %p807_p0 = scmp.lt.s32.totalorder %s1133_s10, %s805_s16 }
 0x1eb   : > { %p808_p1 = scmp.lt.s32.totalorder %s806_s17, %s800_s15 }
 0x1ec   : > { %505 = vst.msk [vmem:[%s244_s26 - $0x1] sm:$0xfe] %vm504_vm14, %v456_v31 }
 0x1ed   : > { %p809_p2 = por %p808_p1, %p807_p0 }
 0x1ef   : > { %p810_p3 = pnand %p809_p2, %p803_p13 }
 0x256   : > { %v525_v9 = vpop.permute.xlu1 %524 }
 0x257   : > { %v527_v10 = vadd.f32 %v525_v9, %v1077_v7 }
 0x258   : > { %v530_v11 = vpop.permute.xlu0 %529 }
 0x259   : > { %v532_v12 = vadd.f32 %v530_v11, %v527_v10 }
 0x25a   : > { %v535_v13 = vpop.permute.xlu1 %534 }
 0x25b   : > { %v537_v43 = vadd.f32 %v535_v13, %v532_v12 }
 0x25c   : > { %v541_v14 = vpop.permute.xlu0 %540 }
 0x25d   : > { %v543_v15 = vmul.f32 %v541_v14, %v537_v43 }
 0x25f   : > { %545 = vrot.lane.b32.xlu1 %v543_v15, %s875_s30 }
 0x2d1   : > { %v546_v28 = vpop.permute.xlu1 %545 }
 0x2d2   : > { %549 = vst.msk [vmem:[%s230_s9] sm:$0xf] %vm548_vm10, %v546_v28 }
 0x2d3   : > { %813 = shalt.err (!%p810_p3)
}
 0x2d4   : > { %s814_s23 = scalar_lea.hbm %s1131_s13, 64  ;;  %s818_s30 = scalar_lea.hbm %s1178_s5, 128 }
 0x2d5   : > { %p815_p4 = scmp.ne.s32.totalorder %s1131_s13, %s814_s23  ;;  %p819_p9 = scmp.lt.u32.totalorder %s1131_s13, %s1178_s5 }
 0x2d6   : > { %p820_p10 = scmp.lt.u32.totalorder %s818_s30, %s814_s23  ;;  %p822_p12 = scmp.lt.u32.totalorder %s814_s23, %s1131_s13 }
 0x2d7   : > { %p816_p7 = pnand %p815_p4, %p945_p5 }
 0x2d8   : > { %p821_p11 = por %p820_p10, %p819_p9 }
 0x2d9   : > { %p817_p8 = pneg %p816_p7 }
 0x2da   : > { %p823_p13 = por %p822_p12, %p821_p11 }
 0x2dc   : > { %p824_p0 = pnand %p823_p13, %p817_p8 }
 0x2de   : > { %827 = shalt.err (!%p824_p0)
}
 0x2df   : > { %741 = dma.vmem_to_hbm [thread:$0]  (%p945_p5), %s1133_s10, 64, %s1131_s13, %s561_s14  }
 0x2e0 PF: > { %p747_p1 = scmp.ge.s32.totalorder %s862_s21, 2  ;;  %s608_s8 = sand.u32 1, %s850_s18  }
 0x2e1   : > { %s609_s9 = scalar_lea.sflag [#allocation3], %s608_s8 }
 0x2e2   : > { %p744_p2 = pnand %p747_p1, %p949_p6 }
 0x2e4   : > { %845 = dma.done.wait (!%p744_p2), %s609_s9, 64  }
 0x2e5   : > { %847 = vsyncadd (!%p744_p2), %s609_s9, 4294967232  ;;  %p16_p3 = scmp.ge.s32.totalorder %s932_s24, 4   ;;  %s1189_s18 = smov %s854_s19 }
 0x2e6   : > { %s1190_s19 = smov %s858_s20  ;;  %s1191_s20 = smov %s943_s27 }
 0x2e7   : > { %s1192_s21 = smov %s932_s24  ;;  %18 = sbr.rel (!%p16_p3) target bundleno = 3 (0x3), region = 91 }
 0x2ee   :  { %614 = vsyncpa [#allocation3], 1 }
 0x2ef   :  { %616 = vsyncpa [#allocation3 + $0x1], 1 }

</bundles_post_ra>
